<compile_context>
chip_gen: v7x
topology: tpu7x:2x2x1
jax: 0.10.0
libtpu: 0.0.40
codegen_flags: <defaults>
</compile_context>

<pallas_src>
import functools

import jax
import jax.numpy as jnp
from jax.experimental import pallas as pl
from jax.experimental.pallas import tpu as pltpu


# ----------------------------------------------------------------------------
# Helpers
# ----------------------------------------------------------------------------

def _round_up(x, m):
    return ((x + m - 1) // m) * m


def _pad_to(x, target_shape):
    pads = [(0, t - s) for s, t in zip(x.shape, target_shape)]
    if any(p[1] for p in pads):
        x = jnp.pad(x, pads)
    return x


def _device_kind():
    try:
        return jax.devices()[0].device_kind.lower()
    except Exception:
        return ""


def _vmem_cap_bytes():
    kind = _device_kind()
    if "v7" in kind:
        return 44 * 1024 * 1024       # v7x: 64 MiB physical -> leave headroom
    if ("v2" in kind) or ("v3" in kind):
        return 12 * 1024 * 1024       # 16 MiB VMEM parts
    return 100 * 1024 * 1024          # v4/v5e/v6e: 128 MiB physical


def _default_blocks():
    kind = _device_kind()
    if "v7" in kind:
        return 256, 256               # smaller VMEM on v7x
    # v5e/v6e: 128 MiB VMEM; mem-bound for small head dims -> large q tiles
    # cut K/V HBM re-reads (Lq/bq factor) and amortize per-step overhead.
    return 512, 256


def _vmem_limit_bytes(bq, bk, d, dv, in_itemsize):
    # Double-buffered Q/K/V/O tiles + f32 m/l/acc scratch + bf16 q scratch
    # + compiler-materialized (bq, bk) f32 temporaries for s / p.
    io = 2 * in_itemsize * (bq * d + bk * d + bk * dv + bq * dv)
    scratch = 4 * (2 * bq + bq * dv) + 2 * bq * d
    temps = 2 * 4 * bq * bk
    need = io + scratch + temps
    return int(min(max(4 * need, 32 * 1024 * 1024), _vmem_cap_bytes()))


# ----------------------------------------------------------------------------
# Flash SDPA Pallas kernel
# ----------------------------------------------------------------------------

def _flash_sdpa_kernel(q_ref, k_ref, v_ref, o_ref,
                       q_bf_ref, m_ref, l_ref, acc_ref,
                       *, scale, kv_len, block_k, masked):
    """One (batch b, q-tile qi, kv-tile ki) grid step of online-softmax SDPA."""
    ki = pl.program_id(2)

    @pl.when(ki == 0)
    def _init():
        m_ref[...] = jnp.full(m_ref.shape, -jnp.inf, dtype=m_ref.dtype)
        l_ref[...] = jnp.zeros(l_ref.shape, dtype=l_ref.dtype)
        acc_ref[...] = jnp.zeros(acc_ref.shape, dtype=acc_ref.dtype)
        # Hoisted once per q tile: scale Q in f32, store as bf16 MXU operand.
        q = q_ref[...].astype(jnp.float32)
        if scale is not None:
            q = q * jnp.float32(scale)
        q_bf_ref[...] = q.astype(jnp.bfloat16)

    # Q @ K^T with bf16 MXU operands, f32 accumulation, no explicit transpose.
    s = jax.lax.dot_general(
        q_bf_ref[...], k_ref[...].astype(jnp.bfloat16),
        dimension_numbers=(((1,), (1,)), ((), ())),
        preferred_element_type=jnp.float32,
    )                                                # (bq, bk), f32

    if masked:
        # Only the last kv tile can contain padded key positions: mask it
        # there and skip the iota/cmp/select work on every other step.
        # NOTE: rows always see >= 1 real key here (key padding only), so the
        # -1e30 scheme cannot produce a fully-masked row.
        def _mask_tail(s_in):
            key_idx = ki * block_k + jax.lax.broadcasted_iota(
                jnp.int32, s_in.shape, 1)
            return jnp.where(key_idx < kv_len, s_in, jnp.float32(-1e30))

        s = jax.lax.cond(ki == pl.num_programs(2) - 1,
                         _mask_tail, lambda t: t, s)

    # Online (streaming) softmax update.
    m_prev = m_ref[...]
    m_new = jnp.maximum(m_prev, jnp.max(s, axis=-1, keepdims=True))
    alpha = jnp.exp(m_prev - m_new)
    p = jnp.exp(s - m_new)

    l_ref[...] = alpha * l_ref[...] + jnp.sum(p, axis=-1, keepdims=True)
    acc_ref[...] = alpha * acc_ref[...] + jnp.dot(
        p.astype(jnp.bfloat16), v_ref[...].astype(jnp.bfloat16),
        preferred_element_type=jnp.float32)
    m_ref[...] = m_new

    @pl.when(ki == pl.num_programs(2) - 1)
    def _finalize():
        inv_l = pl.reciprocal(l_ref[...], approx=True)   # EUP slot, ~free
        o_ref[...] = (acc_ref[...] * inv_l).astype(o_ref.dtype)


def scaled_dot_product_attention(Q, K, V, scale=None, *, block_q=None, block_k=None):
    """Pallas flash-attention implementation of Scaled_Dot_Product_Attention.

    Q: [B, Lq, D], K: [B, Lk, D], V: [B, Lk, Dv]  ->  [B, Lq, Dv]
    Matches the PyTorch module: scores = Q @ K^T; if scale: scores *= scale;
    softmax(dim=-1); context = scores @ V.
    """
    B, Lq, Dq = Q.shape
    Bk, Lk, Dk = K.shape
    Bv, Lv, Dv = V.shape
    assert B == Bk == Bv and Dq == Dk and Lk == Lv

    # Match PyTorch's `if scale:` — falsy scale (None / 0.0) means no scaling.
    if not scale:
        scale = None

    def_bq, def_bk = _default_blocks()
    block_q = block_q or def_bq
    block_k = block_k or def_bk

    # Sequence tiles (sublane-aligned, i.e. multiples of 8).  Feature dims
    # stay UNPADDED: block last dim == full array last dim is legal and
    # avoids the 128/dim_head HBM + MXU blow-up.
    bq = min(block_q, _round_up(Lq, 8))
    bk = min(block_k, _round_up(Lk, 8))
    lq_p = _round_up(Lq, bq)
    lk_p = _round_up(Lk, bk)
    masked = (lk_p != Lk)     # padded key positions must not attend

    Qp = _pad_to(Q, (B, lq_p, Dq))
    Kp = _pad_to(K, (B, lk_p, Dq))
    Vp = _pad_to(V, (B, lk_p, Dv))

    grid = (B, lq_p // bq, lk_p // bk)   # KV (reduction) axis innermost

    kernel = functools.partial(
        _flash_sdpa_kernel, scale=scale, kv_len=Lk, block_k=bk, masked=masked)

    out = pl.pallas_call(
        kernel,
        out_shape=jax.ShapeDtypeStruct((B, lq_p, Dv), Q.dtype),
        grid_spec=pltpu.PrefetchScalarGridSpec(
            num_scalar_prefetch=0,
            grid=grid,
            in_specs=[
                # Leading batch dim squeezed -> kernel sees clean 2-D tiles.
                pl.BlockSpec((None, bq, Dq), lambda b, qi, ki: (b, qi, 0)),
                pl.BlockSpec((None, bk, Dq), lambda b, qi, ki: (b, ki, 0)),
                pl.BlockSpec((None, bk, Dv), lambda b, qi, ki: (b, ki, 0)),
            ],
            # Output block constant across the kv axis -> accumulator-resident.
            out_specs=pl.BlockSpec((None, bq, Dv), lambda b, qi, ki: (b, qi, 0)),
            scratch_shapes=[
                pltpu.VMEM((bq, Dq), jnp.bfloat16),    # scaled bf16 Q (hoisted)
                pltpu.VMEM((bq, 1), jnp.float32),      # running max m
                pltpu.VMEM((bq, 1), jnp.float32),      # running sum l
                pltpu.VMEM((bq, Dv), jnp.float32),     # f32 output accumulator
            ],
        ),
        compiler_params=pltpu.CompilerParams(
            dimension_semantics=("parallel", "parallel", "arbitrary"),
            vmem_limit_bytes=_vmem_limit_bytes(bq, bk, Dq, Dv, Q.dtype.itemsize),
        ),
    )(Qp, Kp, Vp)

    if lq_p != Lq:                      # skip extra HBM pass when un-padded
        out = out[:, :Lq, :]
    return out


# ----------------------------------------------------------------------------
# Pure-JAX reference SDPA (same `if scale:` semantics as the PyTorch module)
# ----------------------------------------------------------------------------

def _sdpa_reference(Q, K, V, scale=None):
    s = jnp.einsum("bqd,bkd->bqk", Q.astype(jnp.float32), K.astype(jnp.float32))
    if scale:
        s = s * scale
    p = jax.nn.softmax(s, axis=-1)
    return jnp.einsum("bqk,bkd->bqd", p, V.astype(jnp.float32)).astype(Q.dtype)


# ----------------------------------------------------------------------------
# Full Transformer forward (eval mode) using the Pallas attention kernel.
# Dropout is identity at inference; LayerNorm is never applied in the
# original forward(), so it is omitted.
# TODO(synk): training-mode dropout (pltpu.prng_*) is not implemented.
# ----------------------------------------------------------------------------

def _linear(x, w, b):
    return jnp.dot(x, w) + b


def _positional_encoding(pad_size, embed):
    pos = jnp.arange(pad_size, dtype=jnp.float32)[:, None]
    i = jnp.arange(embed, dtype=jnp.float32)[None, :]
    angle = pos / jnp.power(10000.0, (jnp.floor(i / 2.0) * 2.0) / embed)
    even = (jnp.arange(embed) % 2) == 0
    return jnp.where(even[None, :], jnp.sin(angle), jnp.cos(angle))


def _multi_head_attention(x, p, num_head, attention_fn):
    B, S, dim_model = x.shape
    dim_head = dim_model // num_head
    Q = _linear(x, p["Wq"], p["bq"])
    K = _linear(x, p["Wk"], p["bk"])
    V = _linear(x, p["Wv"], p["bv"])
    # Same (non-transposing) reshape as the PyTorch .view().
    Q = Q.reshape(B * num_head, -1, dim_head)
    K = K.reshape(B * num_head, -1, dim_head)
    V = V.reshape(B * num_head, -1, dim_head)
    scale = dim_head ** (-0.5)
    ctx = attention_fn(Q, K, V, scale)
    ctx = ctx.reshape(B, -1, dim_head * num_head)
    out = _linear(ctx, p["Wo"], p["bo"])
    return out + x                      # dropout = identity (eval)


def _feed_forward(x, p):
    out = _linear(x, p["W1"], p["b1"])
    out = jax.nn.relu(out)
    out = _linear(out, p["W2"], p["b2"])
    return out + x                      # dropout = identity (eval)


def transformer_forward(x, params, num_head, attention_fn):
    out = _linear(x, params["W_in"], params["b_in"])          # fc: embed -> hidden1
    out = out + params["pe"][None, :out.shape[1], :]          # positional encoding
    for enc in params["encoders"]:
        out = _multi_head_attention(out, enc["mha"], num_head, attention_fn)
        out = _feed_forward(out, enc["ffn"])
    out = out.reshape(out.shape[0], -1)
    return _linear(out, params["W_cls"], params["b_cls"])


def _init_params(key, embed, dim_model, hidden, pad_size, num_classes, num_encoder):
    def dense(k, fan_in, fan_out):
        kw, kb = jax.random.split(k)
        w = jax.random.normal(kw, (fan_in, fan_out), jnp.float32) * 0.1
        b = jax.random.normal(kb, (fan_out,), jnp.float32) * 0.01
        return w, b

    keys = jax.random.split(key, 8)
    W_in, b_in = dense(keys[0], embed, dim_model)
    Wq, bq = dense(keys[1], dim_model, dim_model)
    Wk, bk = dense(keys[2], dim_model, dim_model)
    Wv, bv = dense(keys[3], dim_model, dim_model)
    Wo, bo = dense(keys[4], dim_model, dim_model)
    W1, b1 = dense(keys[5], dim_model, hidden)
    W2, b2 = dense(keys[6], hidden, dim_model)
    W_cls, b_cls = dense(keys[7], pad_size * dim_model, num_classes)

    enc = {
        "mha": {"Wq": Wq, "bq": bq, "Wk": Wk, "bk": bk,
                "Wv": Wv, "bv": bv, "Wo": Wo, "bo": bo},
        "ffn": {"W1": W1, "b1": b1, "W2": W2, "b2": b2},
    }
    return {
        "W_in": W_in, "b_in": b_in,
        "pe": _positional_encoding(pad_size, dim_model),
        # copy.deepcopy in the spec -> identical weights in every encoder.
        "encoders": [enc] * num_encoder,
        "W_cls": W_cls, "b_cls": b_cls,
    }


# ----------------------------------------------------------------------------
# Self-test
# ----------------------------------------------------------------------------

if __name__ == "__main__":
    key = jax.random.PRNGKey(0)
    k1, k2, k3, k4, k5 = jax.random.split(key, 5)

    # --- (a) standalone SDPA, single-tile path -----------------------------
    B, Lq, Lk, D, Dv = 2, 8, 8, 32, 32
    Q = jax.random.normal(k1, (B, Lq, D), jnp.float32)
    K = jax.random.normal(k2, (B, Lk, D), jnp.float32)
    V = jax.random.normal(k3, (B, Lk, Dv), jnp.float32)
    scale = D ** (-0.5)
    out = scaled_dot_product_attention(Q, K, V, scale)
    jax.block_until_ready(out)
    ref = _sdpa_reference(Q, K, V, scale)
    assert out.shape == ref.shape
    assert jnp.allclose(out, ref, atol=3e-2, rtol=3e-2), "SDPA mismatch (single tile)"

    # --- (b) standalone SDPA, multi-tile path with key masking -------------
    B2, Lq2, Lk2 = 2, 24, 20
    Q2 = jax.random.normal(k1, (B2, Lq2, D), jnp.float32)
    K2 = jax.random.normal(k2, (B2, Lk2, D), jnp.float32)
    V2 = jax.random.normal(k3, (B2, Lk2, Dv), jnp.float32)
    out2 = scaled_dot_product_attention(Q2, K2, V2, scale, block_q=16, block_k=16)
    jax.block_until_ready(out2)
    ref2 = _sdpa_reference(Q2, K2, V2, scale)
    assert jnp.allclose(out2, ref2, atol=3e-2, rtol=3e-2), "SDPA mismatch (tiled/masked)"

    # --- (c) full Transformer forward using the Pallas attention -----------
    batch, seq, embed = 2, 16, 20          # pad_size == seq, embedding_size == 20
    dim_model, num_head, hidden = 20, 4, 128
    num_classes, num_encoder = 2, 2
    x = jax.random.normal(k4, (batch, seq, embed), jnp.float32)
    params = _init_params(k5, embed, dim_model, hidden, seq, num_classes, num_encoder)

    logits = transformer_forward(x, params, num_head, scaled_dot_product_attention)
    jax.block_until_ready(logits)
    logits_ref = transformer_forward(x, params, num_head, _sdpa_reference)
    assert logits.shape == (batch, num_classes)
    assert jnp.allclose(logits, logits_ref, atol=5e-2, rtol=5e-2), "Transformer mismatch"

    print("KERNEL_OK")
</pallas_src>

<mosaic_0001>
module attributes {stable_mosaic.version = 11 : i64} {
  func.func @_flash_sdpa_kernel(%arg0: i32, %arg1: i32, %arg2: i32, %arg3: memref<1x8x32xf32, #tpu.memory_space<vmem>>, %arg4: memref<1x8x32xf32, #tpu.memory_space<vmem>>, %arg5: memref<1x8x32xf32, #tpu.memory_space<vmem>>, %arg6: memref<1x8x32xf32, #tpu.memory_space<vmem>>, %arg7: memref<8x32xbf16, #tpu.memory_space<vmem>>, %arg8: memref<8x1xf32, #tpu.memory_space<vmem>>, %arg9: memref<8x1xf32, #tpu.memory_space<vmem>>, %arg10: memref<8x32xf32, #tpu.memory_space<vmem>>) attributes {dimension_semantics = [#tpu.dimension_semantics<parallel>, #tpu.dimension_semantics<parallel>, #tpu.dimension_semantics<arbitrary>], iteration_bounds = array<i64: 2, 1, 1>, scalar_prefetch = 0 : i64, scratch_operands = 4 : i64, tpu.core_type = #tpu.core_type<tc>, window_params = [{transform_indices = @transform_0, window_bounds = array<i64: 1, 8, 32>}, {transform_indices = @transform_1, window_bounds = array<i64: 1, 8, 32>}, {transform_indices = @transform_2, window_bounds = array<i64: 1, 8, 32>}, {transform_indices = @transform_3, window_bounds = array<i64: 1, 8, 32>}]} {
    %c0_i32 = arith.constant 0 : i32
    %0 = arith.cmpi eq, %arg2, %c0_i32 : i32
    %1 = arith.extui %0 : i1 to i32
    %c0_i32_0 = arith.constant 0 : i32
    %2 = arith.cmpi ne, %1, %c0_i32_0 : i32
    scf.if %2 {
      %cst_25 = arith.constant 0xFF800000 : f32
      %37 = vector.broadcast %cst_25 : f32 to vector<8x1xf32>
      %c0_26 = arith.constant 0 : index
      %c0_27 = arith.constant 0 : index
      %38 = vector.load %arg8[%c0_26, %c0_27] : memref<8x1xf32, #tpu.memory_space<vmem>>, vector<8x1xf32>
      tpu.vector_store %arg8[%c0_26, %c0_27], %37 {strides = array<i32>} : memref<8x1xf32, #tpu.memory_space<vmem>>, vector<8x1xf32>,
      %cst_28 = arith.constant 0.000000e+00 : f32
      %39 = vector.broadcast %cst_28 : f32 to vector<8x1xf32>
      %c0_29 = arith.constant 0 : index
      %c0_30 = arith.constant 0 : index
      %40 = vector.load %arg9[%c0_29, %c0_30] : memref<8x1xf32, #tpu.memory_space<vmem>>, vector<8x1xf32>
      tpu.vector_store %arg9[%c0_29, %c0_30], %39 {strides = array<i32>} : memref<8x1xf32, #tpu.memory_space<vmem>>, vector<8x1xf32>,
      %cst_31 = arith.constant 0.000000e+00 : f32
      %41 = vector.broadcast %cst_31 : f32 to vector<8x32xf32>
      %c0_32 = arith.constant 0 : index
      %c0_33 = arith.constant 0 : index
      %42 = vector.load %arg10[%c0_32, %c0_33] : memref<8x32xf32, #tpu.memory_space<vmem>>, vector<8x32xf32>
      tpu.vector_store %arg10[%c0_32, %c0_33], %41 {strides = array<i32>} : memref<8x32xf32, #tpu.memory_space<vmem>>, vector<8x32xf32>,
      %c0_34 = arith.constant 0 : index
      %c0_35 = arith.constant 0 : index
      %c0_36 = arith.constant 0 : index
      %43 = vector.load %arg3[%c0_34, %c0_35, %c0_36] : memref<1x8x32xf32, #tpu.memory_space<vmem>>, vector<1x8x32xf32>
      %44 = vector.shape_cast %43 : vector<1x8x32xf32> to vector<8x32xf32>
      %cst_37 = arith.constant 0.176776692 : f32
      %45 = vector.broadcast %cst_37 : f32 to vector<8x32xf32>
      %46 = arith.mulf %44, %45 : vector<8x32xf32>
      %47 = arith.truncf %46 : vector<8x32xf32> to vector<8x32xbf16>
      %c0_38 = arith.constant 0 : index
      %c0_39 = arith.constant 0 : index
      %48 = vector.load %arg7[%c0_38, %c0_39] : memref<8x32xbf16, #tpu.memory_space<vmem>>, vector<8x32xbf16>
      tpu.vector_store %arg7[%c0_38, %c0_39], %47 {strides = array<i32>} : memref<8x32xbf16, #tpu.memory_space<vmem>>, vector<8x32xbf16>,
    } else {
    }
    %c0 = arith.constant 0 : index
    %c0_1 = arith.constant 0 : index
    %3 = vector.load %arg7[%c0, %c0_1] : memref<8x32xbf16, #tpu.memory_space<vmem>>, vector<8x32xbf16>
    %c0_2 = arith.constant 0 : index
    %c0_3 = arith.constant 0 : index
    %c0_4 = arith.constant 0 : index
    %4 = vector.load %arg4[%c0_2, %c0_3, %c0_4] : memref<1x8x32xf32, #tpu.memory_space<vmem>>, vector<1x8x32xf32>
    %5 = vector.shape_cast %4 : vector<1x8x32xf32> to vector<8x32xf32>
    %6 = arith.truncf %5 : vector<8x32xf32> to vector<8x32xbf16>
    %cst = arith.constant dense<0.000000e+00> : vector<8x8xf32>
    %7 = tpu.matmul %3, %6, %cst {dimension_numbers = #tpu.dot_dimension_numbers<[1], [1], [0], [0], [0, 0, 1, 0], [], []>} : vector<8x32xbf16>, vector<8x32xbf16>, vector<8x8xf32> -> vector<8x8xf32>
    %c0_5 = arith.constant 0 : index
    %c0_6 = arith.constant 0 : index
    %8 = vector.load %arg8[%c0_5, %c0_6] : memref<8x1xf32, #tpu.memory_space<vmem>>, vector<8x1xf32>
    %cst_7 = arith.constant dense<0xFF800000> : vector<8xf32>
    %9 = vector.multi_reduction <maximumf>, %7, %cst_7 [1] : vector<8x8xf32> to vector<8xf32>
    %10 = vector.shape_cast %9 : vector<8xf32> to vector<8x1xf32>
    %11 = arith.maximumf %8, %10 : vector<8x1xf32>
    %12 = arith.subf %8, %11 : vector<8x1xf32>
    %13 = math.exp %12 : vector<8x1xf32>
    %14 = vector.broadcast %11 : vector<8x1xf32> to vector<8x8xf32>
    %15 = arith.subf %7, %14 : vector<8x8xf32>
    %16 = math.exp %15 : vector<8x8xf32>
    %c0_8 = arith.constant 0 : index
    %c0_9 = arith.constant 0 : index
    %17 = vector.load %arg9[%c0_8, %c0_9] : memref<8x1xf32, #tpu.memory_space<vmem>>, vector<8x1xf32>
    %18 = arith.mulf %13, %17 : vector<8x1xf32>
    %cst_10 = arith.constant dense<0.000000e+00> : vector<8xf32>
    %19 = vector.multi_reduction <add>, %16, %cst_10 [1] : vector<8x8xf32> to vector<8xf32>
    %20 = vector.shape_cast %19 : vector<8xf32> to vector<8x1xf32>
    %21 = arith.addf %18, %20 : vector<8x1xf32>
    %c0_11 = arith.constant 0 : index
    %c0_12 = arith.constant 0 : index
    %22 = vector.load %arg9[%c0_11, %c0_12] : memref<8x1xf32, #tpu.memory_space<vmem>>, vector<8x1xf32>
    tpu.vector_store %arg9[%c0_11, %c0_12], %21 {strides = array<i32>} : memref<8x1xf32, #tpu.memory_space<vmem>>, vector<8x1xf32>,
    %c0_13 = arith.constant 0 : index
    %c0_14 = arith.constant 0 : index
    %23 = vector.load %arg10[%c0_13, %c0_14] : memref<8x32xf32, #tpu.memory_space<vmem>>, vector<8x32xf32>
    %24 = vector.broadcast %13 : vector<8x1xf32> to vector<8x32xf32>
    %25 = arith.mulf %24, %23 : vector<8x32xf32>
    %26 = arith.truncf %16 : vector<8x8xf32> to vector<8x8xbf16>
    %c0_15 = arith.constant 0 : index
    %c0_16 = arith.constant 0 : index
    %c0_17 = arith.constant 0 : index
    %27 = vector.load %arg5[%c0_15, %c0_16, %c0_17] : memref<1x8x32xf32, #tpu.memory_space<vmem>>, vector<1x8x32xf32>
    %28 = vector.shape_cast %27 : vector<1x8x32xf32> to vector<8x32xf32>
    %29 = arith.truncf %28 : vector<8x32xf32> to vector<8x32xbf16>
    %cst_18 = arith.constant dense<0.000000e+00> : vector<8x32xf32>
    %30 = tpu.matmul %26, %29, %cst_18 {dimension_numbers = #tpu.dot_dimension_numbers<[1], [0], [0], [1], [0, 0, 1, 1], [], []>} : vector<8x8xbf16>, vector<8x32xbf16>, vector<8x32xf32> -> vector<8x32xf32>
    %31 = arith.addf %25, %30 : vector<8x32xf32>
    %c0_19 = arith.constant 0 : index
    %c0_20 = arith.constant 0 : index
    %32 = vector.load %arg10[%c0_19, %c0_20] : memref<8x32xf32, #tpu.memory_space<vmem>>, vector<8x32xf32>
    tpu.vector_store %arg10[%c0_19, %c0_20], %31 {strides = array<i32>} : memref<8x32xf32, #tpu.memory_space<vmem>>, vector<8x32xf32>,
    %c0_21 = arith.constant 0 : index
    %c0_22 = arith.constant 0 : index
    %33 = vector.load %arg8[%c0_21, %c0_22] : memref<8x1xf32, #tpu.memory_space<vmem>>, vector<8x1xf32>
    tpu.vector_store %arg8[%c0_21, %c0_22], %11 {strides = array<i32>} : memref<8x1xf32, #tpu.memory_space<vmem>>, vector<8x1xf32>,
    %c0_i32_23 = arith.constant 0 : i32
    %34 = arith.cmpi eq, %arg2, %c0_i32_23 : i32
    %35 = arith.extui %34 : i1 to i32
    %c0_i32_24 = arith.constant 0 : i32
    %36 = arith.cmpi ne, %35, %c0_i32_24 : i32
    scf.if %36 {
      %c0_25 = arith.constant 0 : index
      %c0_26 = arith.constant 0 : index
      %37 = vector.load %arg9[%c0_25, %c0_26] : memref<8x1xf32, #tpu.memory_space<vmem>>, vector<8x1xf32>
      %38 = tpu.reciprocal %37 {approx = true} : vector<8x1xf32> -> vector<8x1xf32>
      %c0_27 = arith.constant 0 : index
      %c0_28 = arith.constant 0 : index
      %39 = vector.load %arg10[%c0_27, %c0_28] : memref<8x32xf32, #tpu.memory_space<vmem>>, vector<8x32xf32>
      %40 = vector.broadcast %38 : vector<8x1xf32> to vector<8x32xf32>
      %41 = arith.mulf %39, %40 : vector<8x32xf32>
      %c0_29 = arith.constant 0 : index
      %c0_30 = arith.constant 0 : index
      %c0_31 = arith.constant 0 : index
      %42 = vector.load %arg6[%c0_29, %c0_30, %c0_31] : memref<1x8x32xf32, #tpu.memory_space<vmem>>, vector<1x8x32xf32>
      %43 = vector.shape_cast %42 : vector<1x8x32xf32> to vector<8x32xf32>
      %44 = vector.shape_cast %41 : vector<8x32xf32> to vector<1x8x32xf32>
      tpu.vector_store %arg6[%c0_29, %c0_30, %c0_31], %44 {strides = array<i32>} : memref<1x8x32xf32, #tpu.memory_space<vmem>>, vector<1x8x32xf32>,
    } else {
    }
    return
  }
  func.func @transform_0(%arg0: i32, %arg1: i32, %arg2: i32) -> (i32, i32, i32) {
    %c0_i32 = arith.constant 0 : i32
    %c0_i32_0 = arith.constant 0 : i32
    return %arg0, %arg1, %c0_i32 : i32, i32, i32
  }
  func.func @transform_1(%arg0: i32, %arg1: i32, %arg2: i32) -> (i32, i32, i32) {
    %c0_i32 = arith.constant 0 : i32
    %c0_i32_0 = arith.constant 0 : i32
    return %arg0, %arg2, %c0_i32 : i32, i32, i32
  }
  func.func @transform_2(%arg0: i32, %arg1: i32, %arg2: i32) -> (i32, i32, i32) {
    %c0_i32 = arith.constant 0 : i32
    %c0_i32_0 = arith.constant 0 : i32
    return %arg0, %arg2, %c0_i32 : i32, i32, i32
  }
  func.func @transform_3(%arg0: i32, %arg1: i32, %arg2: i32) -> (i32, i32, i32) {
    %c0_i32 = arith.constant 0 : i32
    %c0_i32_0 = arith.constant 0 : i32
    return %arg0, %arg1, %c0_i32 : i32, i32, i32
  }
}

</mosaic_0001>

<bundles_post_ra>
// kernel: tpu_custom_call.1
= control target key start
LH: loop header
LB: loop body
LE: loop exit
PB: predicated region body
PF: predicated region fallthrough
CT: control target
= control target key end

     0   :  { %s1196_s0 = inlined_call_operand.hbm [shape: f32[2,8,32], index: 0, kind: input, shape index: {}]   ;;  %s1197_s1 = inlined_call_operand.hbm [shape: f32[2,8,32], index: 1, kind: input, shape index: {}]   ;;  %s1198_s2 = inlined_call_operand.hbm [shape: f32[2,8,32], index: 2, kind: input, shape index: {}]   ;;  %s1199_s3 = inlined_call_operand.hbm [shape: f32[2,8,32], index: 3, kind: output, shape index: {}]  }
   0x1   :  { %1205 = sst [smem:[#allocation19_spill]] %s1197_s1 }
   0x2   :  { %8 = vsyncpa [#allocation7], 0 }
   0x3   :  { %10 = vsyncpa [#allocation7 + $0x1], 0 }
   0x4   :  { %11 = vsyncpa [#allocation10], 0 }
   0x5   :  { %13 = vsyncpa [#allocation10 + $0x1], 0 }
   0x6   :  { %14 = vsyncpa [#allocation8], 0 }
   0x7   :  { %16 = vsyncpa [#allocation8 + $0x1], 0  ;;  %s920_s12 = smov 0   ;;  %s922_s13 = smov 0  }
   0x8   :  { %s924_s14 = smov 0   ;;  %s926_s15 = smov 0  }
   0x9   :  { %s928_s16 = smov 0   ;;  %s930_s17 = smov 0  }
   0xa LB: > { %1206 = sst [smem:[#allocation16_spill]] %s886_s16  ;;  %s951_s18 = sadd.s32 4294967295, %s890_s17   ;;  %s890_s17 = sphi %s930_s17, %s22_s17   ;;  %s886_s16 = sphi %s928_s16, %s1227_s16   ;;  %s882_s15 = sphi %s926_s15, %s1226_s15   ;;  %s878_s14 = sphi %s924_s14, %s1230_s14   ;;  %s874_s13 = sphi %s922_s13, %s1229_s13   ;;  %s870_s12 = sphi %s920_s12, %s1228_s12  }
   0xb   : > { %s594_s19 = sadd.s32 4294967294, %s890_s17   ;;  %s41_s20 = sadd.s32 1, %s886_s16 }
   0xc   : > { %s50_s21 = sadd.s32 1, %s878_s14  ;;  %p43_p0 = scmp.ge.s32.totalorder %s41_s20, 2 }
   0xd   : > { %p57_p1 = scmp.ne.s32.totalorder %s878_s14, %s874_s13  ;;  %p58_p2 = scmp.eq.s32.totalorder %s890_s17, 0 }
   0xe   : > { %p63_p3 = scmp.ne.s32.totalorder %s874_s13, %s870_s12  ;;  %s1232_s20 = smov (%p43_p0, %s41_s20), 0 }
   0xf   : > { %1207 = sst [smem:[#allocation17_spill]] %s1232_s20  ;;  %p963_p4 = por %p58_p2, %p57_p1 }
  0x10   : > { %p64_p5 = scmp.eq.s32.totalorder %s951_s18, 0  ;;  %s45_s23 = ssub.s32 %s886_s16, %s1232_s20 }
  0x11   : > { %p145_p6 = scmp.eq.s32.totalorder %s951_s18, 1  ;;  %p48_p7 = scmp.eq.s32.totalorder %s45_s23, 0 }
  0x12   : > { %p971_p8 = por %p64_p5, %p63_p3  ;;  %p151_p10 = scmp.eq.s32.totalorder %s594_s19, 1 }
  0x13   : > { %p975_p9 = por %p145_p6, %p57_p1  ;;  %p652_p13 = scmp.lt.s32.totalorder %s890_s17, 2 }
  0x14   : > { %s1209_s24 = scalar_select %p971_p8, 1, 0 }
  0x15   : > { %s1210_s25 = scalar_select %p975_p9, 1, 0 }
  0x16   : > { %s980_s26 = scalar_select %p48_p7, %s878_s14, %s50_s21  }
  0x17   : > { %p982_p11 = por %p151_p10, %p63_p3  ;;  %s171_s28 = sand.u32 1, %s878_s14  }
  0x18   : > { %1211 = sst [smem:[#allocation18_spill]] %s980_s26  ;;  %s991_s29 = sshll.u32 %s171_s28, 3 }
  0x19   : > { %s1212_s27 = scalar_select %p982_p11, 1, 0 }
  0x1a   : > { %s994_s30 = sshll.u32 %s886_s16, 7  ;;  %p998_p0 = pnand %p652_p13, %p963_p4 }
  0x1b   : > { %s190_s5 = sand.u32 1, %s890_s17   ;;  %s1214_s1 = sld [smem:[#allocation19_spill]] }
  0x1c   : > { %s1213_s4 = scalar_select %p998_p0, 1, 0 }
  0x1d   : > { %s194_s9 = scalar_lea.vmem [#allocation9], %s991_s29  ;;  %s1014_s11 = scalar_lea.sflag [#allocation10], %s190_s5 }
  0x1e   : > { %s202_s10 = sshll.u32 %s194_s9, 4  ;;  %p1020_p4 = pneg %p998_p0  ;;  %s1011_s10 = int_to_ptr.vmem [resolvable:$true] %s202_s10 }
  0x21   : > { %s1007_s8 = scalar_lea.hbm %s1214_s1, %s994_s30  ;;  %s719_s6 = scalar_lea.hbm %s1214_s1, 256 }
  0x22   : > { %s714_s19 = scalar_lea.hbm %s1007_s8, 128  ;;  %p720_p7 = scmp.lt.u32.totalorder %s1007_s8, %s1214_s1 }
  0x23   : > { %p715_p3 = scmp.ne.s32.totalorder %s1007_s8, %s714_s19  ;;  %p721_p10 = scmp.lt.u32.totalorder %s719_s6, %s714_s19 }
  0x24   : > { %p723_p12 = scmp.lt.u32.totalorder %s714_s19, %s1007_s8 }
  0x25   : > { %p717_p5 = pnand %p1020_p4, %p715_p3  ;;  %p722_p13 = por %p721_p10, %p720_p7 }
  0x27   : > { %p718_p6 = pneg %p717_p5  ;;  %p724_p1 = por %p723_p12, %p722_p13 }
  0x29   : > { %p725_p2 = pnand %p724_p1, %p718_p6 }
  0x2b   : > { %728 = shalt.err (!%p725_p2)
}
  0x2c   : > { %s729_s5 = scalar_lea.vmem %s1011_s10, 128  ;;  %s892_s22 = smov [#allocation9]  }
  0x2d   : > { %p730_p3 = scmp.ne.s32.totalorder %s1011_s10, %s729_s5  ;;  %s734_s23 = sshll.u32 %s892_s22, 4  ;;  %s735_s23 = int_to_ptr.vmem [resolvable:$false] %s734_s23 }
  0x2e   : > { %s736_s7 = scalar_lea.vmem %s735_s23, 256  ;;  %p737_p9 = scmp.lt.s32.totalorder %s1011_s10, %s735_s23 }
  0x2f   : > { %p732_p5 = pnand %p730_p3, %p1020_p4  ;;  %p738_p8 = scmp.lt.s32.totalorder %s736_s7, %s729_s5 }
  0x31   : > { %p733_p11 = pneg %p732_p5  ;;  %p739_p7 = por %p738_p8, %p737_p9 }
  0x33   : > { %p740_p10 = pnand %p739_p7, %p733_p11 }
  0x35   : > { %743 = shalt.err (!%p740_p10)
}
  0x36   : > { %644 = dma.hbm_to_vmem [thread:$0]  (!%p998_p0), %s1007_s8, 128, %s1011_s10, %s1014_s11  }
  0x37   : > { %p1216_p12 = scmp.lt.s32.totalorder %s890_s17, 3  ;;  %p1217_p1 = scmp.ge.s32.totalorder %s890_s17, 1 }
  0x38   : > { %s1056_s5 = scalar_lea.hbm %s1196_s0, %s994_s30  ;;  %s175_s22 = scalar_lea.vmem [#allocation6], %s991_s29 }
  0x39   : > { %p1048_p2 = pnand %p1217_p1, %p1216_p12  ;;  %s183_s23 = sshll.u32 %s175_s22, 4  ;;  %s1059_s23 = int_to_ptr.vmem [resolvable:$true] %s183_s23 }
  0x3a   : > { %s1065_s7 = scalar_lea.hbm %s1198_s2, %s994_s30  ;;  %s172_s1 = scalar_lea.sflag [#allocation7], %s171_s28 }
  0x3b   : > { %s1218_s19 = scalar_select %p1048_p2, 1, 0 }
  0x3c   : > { %s744_s20 = scalar_lea.hbm %s1056_s5, 128  ;;  %s749_s16 = scalar_lea.hbm %s1196_s0, 256 }
  0x3d   : > { %p745_p8 = scmp.ne.s32.totalorder %s1056_s5, %s744_s20  ;;  %p750_p6 = scmp.lt.u32.totalorder %s1056_s5, %s1196_s0 }
  0x3e   : > { %p751_p13 = scmp.lt.u32.totalorder %s749_s16, %s744_s20  ;;  %p753_p5 = scmp.lt.u32.totalorder %s744_s20, %s1056_s5 }
  0x3f   : > { %p747_p9 = pnand %p745_p8, %p1020_p4 }
  0x40   : > { %p752_p3 = por %p751_p13, %p750_p6 }
  0x41   : > { %p748_p11 = pneg %p747_p9 }
  0x42   : > { %p754_p7 = por %p753_p5, %p752_p3 }
  0x44   : > { %p755_p10 = pnand %p754_p7, %p748_p11 }
  0x46   : > { %758 = shalt.err (!%p755_p10)
}
  0x47   : > { %s759_s28 = scalar_lea.vmem %s1059_s23, 128  ;;  %s893_s30 = smov [#allocation6]  }
  0x48   : > { %p760_p12 = scmp.ne.s32.totalorder %s1059_s23, %s759_s28  ;;  %s764_s8 = sshll.u32 %s893_s30, 4  ;;  %s765_s8 = int_to_ptr.vmem [resolvable:$false] %s764_s8 }
  0x49   : > { %s766_s26 = scalar_lea.vmem %s765_s8, 256  ;;  %p767_p9 = scmp.lt.s32.totalorder %s1059_s23, %s765_s8 }
  0x4a   : > { %p762_p1 = pnand %p760_p12, %p1020_p4  ;;  %p768_p2 = scmp.lt.s32.totalorder %s766_s26, %s759_s28 }
  0x4c   : > { %p763_p8 = pneg %p762_p1  ;;  %p769_p6 = por %p768_p2, %p767_p9 }
  0x4e   : > { %p770_p13 = pnand %p769_p6, %p763_p8 }
  0x50   : > { %773 = shalt.err (!%p770_p13)
}
  0x51   : > { %641 = dma.hbm_to_vmem [thread:$0]  (!%p998_p0), %s1056_s5, 128, %s1059_s23, %s172_s1  }
  0x52   : > { %s213_s16 = scalar_lea.vmem [#allocation11], %s991_s29  ;;  %s774_s10 = scalar_lea.hbm %s1065_s7, 128 }
  0x53   : > { %s221_s20 = sshll.u32 %s213_s16, 4  ;;  %p775_p11 = scmp.ne.s32.totalorder %s1065_s7, %s774_s10  ;;  %s222_s20 = int_to_ptr.vmem [resolvable:$true] %s221_s20 }
  0x54   : > { %s779_s22 = scalar_lea.hbm %s1198_s2, 256  ;;  %p780_p5 = scmp.lt.u32.totalorder %s1065_s7, %s1198_s2 }
  0x55   : > { %p777_p2 = pnand %p775_p11, %p1020_p4  ;;  %p781_p7 = scmp.lt.u32.totalorder %s779_s22, %s774_s10 }
  0x56   : > { %p783_p12 = scmp.lt.u32.totalorder %s774_s10, %s1065_s7 }
  0x57   : > { %p778_p3 = pneg %p777_p2  ;;  %p782_p10 = por %p781_p7, %p780_p5 }
  0x59   : > { %p784_p1 = por %p783_p12, %p782_p10 }
  0x5b   : > { %p785_p8 = pnand %p784_p1, %p778_p3 }
  0x5d   : > { %788 = shalt.err (!%p785_p8)
}
  0x5e   : > { %s789_s1 = scalar_lea.vmem %s222_s20, 128  ;;  %s894_s29 = smov [#allocation11]  }
  0x5f   : > { %p790_p9 = scmp.ne.s32.totalorder %s222_s20, %s789_s1  ;;  %s794_s5 = sshll.u32 %s894_s29, 4  ;;  %s795_s5 = int_to_ptr.vmem [resolvable:$false] %s794_s5 }
  0x60   : > { %s796_s23 = scalar_lea.vmem %s795_s5, 256  ;;  %p797_p11 = scmp.lt.s32.totalorder %s222_s20, %s795_s5 }
  0x61   : > { %p792_p6 = pnand %p790_p9, %p1020_p4  ;;  %p798_p2 = scmp.lt.s32.totalorder %s796_s23, %s789_s1 }
  0x63   : > { %p793_p13 = pneg %p792_p6  ;;  %p799_p0 = por %p798_p2, %p797_p11 }
  0x65   : > { %p800_p5 = pnand %p799_p0, %p793_p13 }
  0x67   : > { %803 = shalt.err (!%p800_p5)
}
  0x68   : > { %p1219_p7 = scmp.ne.s32.totalorder %s1213_s4, 0  ;;  %p1220_p3 = scmp.ne.s32.totalorder %s1218_s19, 0 }
  0x69   : > { %s1112_s21 = sand.u32 (!%p1220_p3), 1, %s874_s13   ;;  %p1221_p0 = scmp.ne.s32.totalorder (!%p1220_p3), %s1209_s24, 0 }
  0x6a   : > { %647 = dma.hbm_to_vmem [thread:$0]  (!%p1219_p7), %s1065_s7, 128, %s222_s20, %s1014_s11  }
  0x6b   : > { %230 = sbr.rel (%p1220_p3) target bundleno = 939 (0x3ab), region = 32  ;;  %s1115_s8 = sshll.u32 (!%p1220_p3), %s1112_s21, 3 }
  0x6c   : > { %s233_s26 = scalar_lea.sflag (!%p1220_p3), [#allocation7], %s1112_s21  ;;  %s236_s16 = scalar_lea.vmem (!%p1220_p3), [#allocation6], %s1115_s8 }
  0x72   : > { %857 = dma.done.wait (%p1221_p0), %s233_s26, 128  }
  0x73   : > { %859 = vsyncadd (%p1221_p0), %s233_s26, 4294967168  ;;  %s241_s4 = sand.u32 1, %s951_s18   ;;  %s245_s19 = scalar_lea.vmem [#allocation9], %s1115_s8 }
  0x74   : > { %s242_s11 = scalar_lea.sflag [#allocation10], %s241_s4 }
  0x75   : > { %861 = dma.done.wait (%p1221_p0), %s242_s11, 256  }
  0x76   : > { %863 = vsyncadd (%p1221_p0), %s242_s11, 4294967040  ;;  %vm295_vm0 = vcmask 261120   ;;  %v895_v0 = vmov 0.0   ;;  %vm896_vm1 = vmmov 0   ;;  %v303_v1 = vld [vmem:[%s245_s19] sm:$0xff]  ;;  %v297_v2 = vld [vmem:[%s236_s16] sm:$0xff] }
  0x77   : > { %618 = vmatprep.subr.bf16.mxu0 %v895_v0  ;;  %296 = vst.msk [vmem:[#allocation5] sm:$0xff] %vm295_vm0, %v895_v0  ;;  %620 = vmatprep.mubr.msk.bf16.mxu0 %vm896_vm1, %v895_v0  ;;  %v304_v3 = vpack.c.bf16 %v303_v1, %v303_v1  ;;  %v298_v4 = vmul.f32 0.17677669, %v297_v2  ;;  %vm300_vm2 = vcmask 257024   ;;  %vm292_vm3 = vcmask 7168   ;;  %s254_s18 = scalar_lea.vmem [#allocation11], %s1115_s8 }
  0x78   : > { %624 = vmatprep.subr.bf16.mxu1 %v895_v0  ;;  %626 = vmatprep.mubr.msk.bf16.mxu1 %vm896_vm1, %v895_v0  ;;  %v897_v8 = vmov -inf   ;;  %294 = vst.msk [vmem:[#allocation4] sm:$0xff] %vm292_vm3, %v895_v0  ;;  %vm353_vm4 = vcmask 64512   ;;  %v898_v14 = vmov 0   ;;  %v385_v19 = vld [vmem:[%s254_s18] sm:$0xff]  ;;  %vm390_vm5 = vcmask 1043456  }
  0x79   : > { %v310_v5 = vsel %vm295_vm0, %v304_v3, 0  ;;  %v299_v6 = vpack.c.bf16 %v298_v4, %v298_v4  ;;  %293 = vst.msk [vmem:[#allocation3] sm:$0xff] %vm292_vm3, %v897_v8  ;;  %706 = vset.pattern.permute.xlu0 %v898_v14  ;;  %707 = vset.pattern.permute.xlu1 %v898_v14  ;;  %v386_v20 = vpack.c.bf16 %v385_v19, %v385_v19  ;;  %s611_s24 = sshll.u32 %s882_s15, 7  ;;  %s286_s7 = scalar_lea.vmem [#allocation12], %s1115_s8 }
  0x7a   : > { %619 = vmatpush3.bf16.xpose.msra.mxu0 %v310_v5  ;;  %s465_s20 = sshll.u32 %s286_s7, 4  ;;  %s1146_s9 = scalar_lea.hbm %s1199_s3, %s611_s24  ;;  %s1148_s20 = int_to_ptr.vmem [resolvable:$true] %s465_s20 }
  0x7b   : > { %301 = vst.msk [vmem:[#allocation2] sm:$0xf] %vm300_vm2, %v299_v6  ;;  %v392_v21 = vsel %vm390_vm5, %v386_v20, 0  ;;  %s451_s22 = scalar_lea.sflag [#allocation8], %s1112_s21  ;;  %s804_s28 = scalar_lea.vmem %s1148_s20, 128 }
  0x7c   : > { %625 = vmatpush3.bf16.msra.mxu1 %v392_v21  ;;  %p805_p4 = scmp.ne.s32.totalorder %s1148_s20, %s804_s28  ;;  %p1222_p10 = scmp.ne.s32.totalorder %s1210_s25, 0 }
  0x7d   : > { %s899_s15 = smov [#allocation12]  }
  0x7e   : > { %v377_v36 = vld [vmem:[#allocation5] sm:$0xff]  ;;  %p806_p12 = pnand %p805_p4, %p1222_p10  ;;  %s808_s30 = sshll.u32 %s899_s15, 4  ;;  %s809_s30 = int_to_ptr.vmem [resolvable:$false] %s808_s30 }
  0x7f   : > { %v369_v30 = vld [vmem:[#allocation4] sm:$0xff]  ;;  %s810_s1 = scalar_lea.vmem %s809_s30, 256  ;;  %p811_p8 = scmp.lt.s32.totalorder %s1148_s20, %s809_s30 }
  0x80   : > { %v352_v15 = vld [vmem:[#allocation3] sm:$0xff]  ;;  %p807_p1 = pneg %p806_p12  ;;  %p812_p9 = scmp.lt.s32.totalorder %s810_s1, %s804_s28 }
  0x82   : > { %v302_v7 = vld [vmem:[#allocation2] sm:$0xf]  ;;  %p813_p6 = por %p812_p9, %p811_p8 }
  0x83   : > { %621 = vmatmul.mubr.msk.bf16.vlgmr.msra.gmra.mrb[0].mxu0 %vm295_vm0, %v302_v7 }
  0x84   : > { %p814_p13 = pnand %p813_p6, %p807_p1 }
 0x156   : > { %v346_v9 = vpop.f32.mrb[0].mxu0 }
 0x157   : > { %v622_v10 = vpop.f32.mrb[1].mxu0  ;;  %v354_v11 = vsel %vm353_vm4, %v346_v9, -inf }
 0x158   : > { %355 = vmax.xlane.f32.xlu0 %v354_v11  ;;  %v349_v12 = vpop.f32.mrb[2].mxu0 }
 0x159   : > { %v623_v13 = vpop.f32.mrb[3].mxu0 }
 0x1e5   : > { %v356_v16 = vpop.xlane.xlu0 %355 }
 0x1e6   : > { %v357_v17 = vmax.f32 %v352_v15, %v356_v16 }
 0x1e8   : > { %v358_v18 = vsub.f32 %v352_v15, %v357_v17  ;;  %436 = vst.msk [vmem:[#allocation3] sm:$0xff] %vm292_vm3, %v357_v17  ;;  %363 = vperm.xlu0 %706, %v357_v17  }
 0x1ea   : > { %v359_v28 = vmul.f32 1.442695, %v358_v18 }
 0x267   : > { %v364_v22 = vpop.permute.xlu0 %363 }
 0x268   : > { %v366_v23 = vsub.f32 %v346_v9, %v364_v22 }
 0x26a   : > { %v367_v24 = vmul.f32 1.442695, %v366_v23 }
 0x26c   : > { %708 = vpow2.f32 %v367_v24 }
 0x26d   : > { %710 = vpow2.f32 %v359_v28 }
 0x276   : > { %v709_v25 = vpop.eup %708 }
 0x277   : > { %v371_v26 = vsel %vm353_vm4, %v709_v25, 0.0  ;;  %v384_v27 = vpack.c.bf16 %v709_v25, %v709_v25  ;;  %v711_v29 = vpop.eup %710 }
 0x278   : > { %372 = vadd.xlane.f32.xlu1 %v371_v26  ;;  %v370_v31 = vmul.f32 %v711_v29, %v369_v30 }
 0x279   : > { %627 = vmatmul.mubr.msk.bf16.vlgmr.msra.gmra.mrb[0].mxu1 %vm353_vm4, %v384_v27 }
 0x289   : > { %380 = vperm.xlu1 %707, %v711_v29  }
 0x305   : > { %v373_v32 = vpop.xlane.xlu1 %372 }
 0x306   : > { %v374_v33 = vadd.f32 %v373_v32, %v370_v31 }
 0x308   : > { %376 = vst.msk [vmem:[#allocation4] sm:$0xff] %vm292_vm3, %v374_v33 }
 0x309   : > { %v381_v37 = vpop.permute.xlu1 %380 }
 0x30a   : > { %v383_v38 = vmul.f32 %v381_v37, %v377_v36 }
 0x30f   : > { %v440_v34 = vld [vmem:[#allocation4] sm:$0xff] }
 0x310   : > { %712 = vrcp.f32 %v440_v34 }
 0x31a   : > { %v713_v35 = vpop.eup %712 }
 0x31b   : > { %445 = vperm.xlu1 %707, %v713_v35  }
 0x34c   : > { %v428_v39 = vpop.f32.mrb[0].mxu1 }
 0x34d   : > { %v434_v40 = vadd.f32 %v428_v39, %v383_v38  ;;  %v628_v41 = vpop.f32.mrb[1].mxu1 }
 0x34e   : > { %v431_v42 = vpop.f32.mrb[2].mxu1 }
 0x34f   : > { %435 = vst.msk [vmem:[#allocation5] sm:$0xff] %vm295_vm0, %v434_v40  ;;  %v629_v43 = vpop.f32.mrb[3].mxu1 }
 0x356   : > { %v442_v44 = vld [vmem:[#allocation5] sm:$0xff] }
 0x39a   : > { %v446_v45 = vpop.permute.xlu1 %445 }
 0x39b   : > { %v448_v46 = vmul.f32 %v446_v45, %v442_v44 }
 0x39d   : > { %449 = vst.msk [vmem:[%s286_s7] sm:$0xff] %vm295_vm0, %v448_v46 }
 0x39e   : > { %817 = shalt.err (!%p814_p13)
}
 0x39f   : > { %s818_s29 = scalar_lea.hbm %s1146_s9, 128  ;;  %s822_s21 = scalar_lea.hbm %s1199_s3, 256 }
 0x3a0   : > { %p819_p11 = scmp.ne.s32.totalorder %s1146_s9, %s818_s29  ;;  %p823_p7 = scmp.lt.u32.totalorder %s1146_s9, %s1199_s3 }
 0x3a1   : > { %p824_p3 = scmp.lt.u32.totalorder %s822_s21, %s818_s29  ;;  %p826_p4 = scmp.lt.u32.totalorder %s818_s29, %s1146_s9 }
 0x3a2   : > { %p820_p2 = pnand %p819_p11, %p1222_p10 }
 0x3a3   : > { %p825_p0 = por %p824_p3, %p823_p7 }
 0x3a4   : > { %p821_p5 = pneg %p820_p2 }
 0x3a5   : > { %p827_p12 = por %p826_p4, %p825_p0 }
 0x3a7   : > { %p828_p1 = pnand %p827_p12, %p821_p5 }
 0x3a9   : > { %831 = shalt.err (!%p828_p1)
}
 0x3aa   : > { %636 = dma.vmem_to_hbm [thread:$0]  (%p1222_p10), %s1148_s20, 128, %s1146_s9, %s451_s22  }
 0x3ab PF: > { %s477_s16 = sand.u32 1, %s870_s12   ;;  %p1223_p8 = scmp.ne.s32.totalorder %s1212_s27, 0 }
 0x3ac   : > { %p1224_p9 = scmp.ge.s32.totalorder %s890_s17, 2  ;;  %s478_s4 = scalar_lea.sflag [#allocation8], %s477_s16 }
 0x3ae   : > { %p649_p6 = pnand %p1224_p9, %p1223_p8 }
 0x3b0   : > { %865 = dma.done.wait (!%p649_p6), %s478_s4, 128  }
 0x3b1   : > { %867 = vsyncadd (!%p649_p6), %s478_s4, 4294967168  ;;  %s22_s17 = sadd.s32 1, %s890_s17   ;;  %s1225_s25 = sld [smem:[#allocation18_spill]] }
 0x3b2   : > { %p19_p13 = scmp.ge.s32.totalorder %s22_s17, 4   ;;  %s1226_s15 = sld [smem:[#allocation16_spill]] }
 0x3b3   : > { %s1227_s16 = sld [smem:[#allocation17_spill]]  ;;  %s1228_s12 = smov %s874_s13 }
 0x3b4   : > { %s1229_s13 = smov %s878_s14  ;;  %21 = sbr.rel (!%p19_p13) target bundleno = 10 (0xa), region = 109 }
 0x3b7   : > { %s1230_s14 = smov %s1225_s25 }
 0x3bb   :  { %483 = vsyncpa [#allocation7], 1 }
 0x3bc   :  { %485 = vsyncpa [#allocation7 + $0x1], 1 }
 0x3bd   :  { %486 = vsyncpa [#allocation10], 1 }
 0x3be   :  { %488 = vsyncpa [#allocation10 + $0x1], 1 }
 0x3bf   :  { %489 = vsyncpa [#allocation8], 1 }
 0x3c0   :  { %491 = vsyncpa [#allocation8 + $0x1], 1 }

</bundles_post_ra>
